<compile_context>
chip_gen: v5e
topology: v5e:2x2
jax: 0.10.0
libtpu: 0.0.40
codegen_flags: <defaults>
</compile_context>

<pallas_src>
import jax
import jax.numpy as jnp
from jax import lax
from jax.experimental import pallas as pl
from jax.experimental.pallas import tpu as pltpu


def _se_kernel(x_ref, w1t_ref, w2t_ref, o_ref):
    # x_ref: (TB, C) batch tile; w1t_ref: (C, H), w2t_ref: (H, C) -- VMEM-resident weights.
    x = x_ref[...]
    # Squeeze: AdaptiveAvgPool1d(1) over a size-1 trailing dim is the identity.
    h = jnp.dot(x.astype(w1t_ref.dtype), w1t_ref[...],
                preferred_element_type=jnp.float32)              # (TB, H) == x @ W1.T
    h = jnp.maximum(h, 0.0)                                      # ReLU (f32)
    y = jnp.dot(h.astype(w2t_ref.dtype), w2t_ref[...],
                preferred_element_type=jnp.float32)              # (TB, C) == h @ W2.T
    y = jax.nn.sigmoid(y)                                        # Sigmoid gate (f32, EUP)
    # Elementwise gate in f32; cast to the storage dtype only at the store.
    o_ref[...] = (x.astype(jnp.float32) * y).astype(o_ref.dtype)


def _round_up(v, m):
    return ((v + m - 1) // m) * m


def _vmem_params():
    """(working-set budget, vmem_limit_bytes) tuned per generation."""
    kind = ""
    try:
        kind = jax.devices()[0].device_kind.lower()
    except Exception:  # pragma: no cover - defensive
        pass
    if "v5" in kind or "v6" in kind:
        # 128 MiB physical VMEM: large tiles amortize the ~0.35 us/grid-step overhead.
        return 80 * 1024 * 1024, 96 * 1024 * 1024
    # v7x has only 64 MiB per TensorCore; unknown chips get the safe setting too.
    return 40 * 1024 * 1024, 48 * 1024 * 1024


def _choose_block_b(b, c, h, x_itemsize, w_itemsize, budget):
    """Largest batch tile whose VMEM working set fits `budget` (bytes-based, no hard row cap).

    Working set per grid step (worst case assumes double-buffered weights as a fallback):
      weights   : 2 * (2*C*H*w_itemsize)
      x / out   : 2 (dbl-buffered) * 2 (arrays) * TB*C*x_itemsize
      f32 temps : TB*(H + 2*C)*4   (hidden, gate, epilogue)
    """
    sub = max(8, 32 // x_itemsize)                      # 8 rows f32, 16 bf16, 32 int8/fp8
    fixed = 2 * (2 * c * h * w_itemsize)
    per_row = 4 * c * x_itemsize + 4 * (h + 2 * c)
    tb = max(sub, ((budget - fixed) // per_row) // sub * sub)
    # Keep >= ~4 grid steps when the batch allows it: v7x's 2 TensorCores shard the "parallel"
    # batch axis, and multiple steps keep the double-buffer pipeline busy.
    tb_split = max(sub, _round_up(-(-b // 4), sub))
    return min(tb, tb_split)


def _weight_spec(shape, single_buffer):
    """Constant-index resident weight spec; single-buffered when the API allows it."""
    if single_buffer and hasattr(pl, "Buffered"):
        try:
            return pl.BlockSpec(shape, lambda i: (0, 0), pipeline_mode=pl.Buffered(1))
        except TypeError:
            pass
    return pl.BlockSpec(shape, lambda i: (0, 0))


def se_block(x, w1, w2, *, block_b=None):
    """x: (B, C); w1: (H, C) = fc[0].weight; w2: (C, H) = fc[2].weight (PyTorch layouts)."""
    b, c = x.shape
    hdim = w1.shape[0]
    assert w1.shape == (hdim, c) and w2.shape == (c, hdim)

    # One-time trace-level transposes so both in-kernel dots are standard (M,K)x(K,N).
    w1t = w1.T    # (C, H)
    w2t = w2.T    # (H, C)

    budget, vmem_limit = _vmem_params()
    if block_b is None:
        block_b = _choose_block_b(b, c, hdim, x.dtype.itemsize, w1.dtype.itemsize, budget)

    # Pad batch to a multiple of the tile: every grid step is a full tile (no per-step masking);
    # padded rows are zero -> their output is zero and gets sliced away.
    b_pad = _round_up(b, block_b)
    x_p = x if b_pad == b else jnp.pad(x, ((0, b_pad - b), (0, 0)))

    def run(single_buffer_weights):
        return pl.pallas_call(
            _se_kernel,
            out_shape=jax.ShapeDtypeStruct((b_pad, c), x.dtype),
            grid=(b_pad // block_b,),
            in_specs=[
                pl.BlockSpec((block_b, c), lambda i: (i, 0)),        # batch-tiled activations
                _weight_spec((c, hdim), single_buffer_weights),      # W1.T, resident
                _weight_spec((hdim, c), single_buffer_weights),      # W2.T, resident
            ],
            out_specs=pl.BlockSpec((block_b, c), lambda i: (i, 0)),
            compiler_params=pltpu.CompilerParams(
                dimension_semantics=("parallel",),                   # megacore split (v7x)
                vmem_limit_bytes=vmem_limit,
            ),
        )(x_p, w1t, w2t)

    try:
        out = run(True)
    except Exception:
        # Fallback without single-buffered weights (any genuine error re-raises here).
        out = run(False)
    return out[:b] if b_pad != b else out


def _reference(x, w1, w2):
    hp = lax.Precision.HIGHEST
    y = jnp.maximum(jnp.dot(x, w1.T, precision=hp), 0.0)
    y = jax.nn.sigmoid(jnp.dot(y, w2.T, precision=hp))
    return x * y


if __name__ == "__main__":
    B, C, REDUCTION = 8, 64, 16
    H = C // REDUCTION

    key = jax.random.PRNGKey(0)
    kx, k1, k2 = jax.random.split(key, 3)

    x = jax.random.normal(kx, (B, C), dtype=jnp.float32)
    # Deterministic synthetic weights (Linear(bias=False) shapes: (out, in))
    w1 = jax.random.normal(k1, (H, C), dtype=jnp.float32) * (1.0 / jnp.sqrt(C))
    w2 = jax.random.normal(k2, (C, H), dtype=jnp.float32) * (1.0 / jnp.sqrt(H))

    out = jax.block_until_ready(se_block(x, w1, w2))

    ref = _reference(x, w1, w2)
    assert out.shape == (B, C)
    assert jnp.allclose(out, ref, atol=1e-3, rtol=1e-3), float(jnp.max(jnp.abs(out - ref)))
    print("KERNEL_OK")
</pallas_src>

<mosaic_0001>
module attributes {stable_mosaic.version = 11 : i64} {
  func.func @_se_kernel(%arg0: i32, %arg1: memref<8x64xf32, #tpu.memory_space<vmem>>, %arg2: memref<64x4xf32, #tpu.memory_space<vmem>>, %arg3: memref<4x64xf32, #tpu.memory_space<vmem>>, %arg4: memref<8x64xf32, #tpu.memory_space<vmem>>) attributes {dimension_semantics = [#tpu.dimension_semantics<parallel>], iteration_bounds = array<i64: 1>, scalar_prefetch = 0 : i64, scratch_operands = 0 : i64, tpu.core_type = #tpu.core_type<tc>, window_params = [{transform_indices = @transform_0, window_bounds = array<i64: 8, 64>}, {pipeline_mode = #tpu.pipeline_mode<synchronous>, transform_indices = @transform_1, window_bounds = array<i64: 64, 4>}, {pipeline_mode = #tpu.pipeline_mode<synchronous>, transform_indices = @transform_2, window_bounds = array<i64: 4, 64>}, {transform_indices = @transform_3, window_bounds = array<i64: 8, 64>}]} {
    %c0 = arith.constant 0 : index
    %c0_0 = arith.constant 0 : index
    %0 = vector.load %arg1[%c0, %c0_0] : memref<8x64xf32, #tpu.memory_space<vmem>>, vector<8x64xf32>
    %c0_1 = arith.constant 0 : index
    %c0_2 = arith.constant 0 : index
    %1 = vector.load %arg2[%c0_1, %c0_2] : memref<64x4xf32, #tpu.memory_space<vmem>>, vector<64x4xf32>
    %cst = arith.constant dense<0.000000e+00> : vector<8x4xf32>
    %2 = tpu.matmul %0, %1, %cst {dimension_numbers = #tpu.dot_dimension_numbers<[1], [0], [0], [1], [0, 0, 1, 1], [], []>} : vector<8x64xf32>, vector<64x4xf32>, vector<8x4xf32> -> vector<8x4xf32>
    %cst_3 = arith.constant 0.000000e+00 : f32
    %3 = vector.broadcast %cst_3 : f32 to vector<8x4xf32>
    %4 = arith.maximumf %2, %3 : vector<8x4xf32>
    %c0_4 = arith.constant 0 : index
    %c0_5 = arith.constant 0 : index
    %5 = vector.load %arg3[%c0_4, %c0_5] : memref<4x64xf32, #tpu.memory_space<vmem>>, vector<4x64xf32>
    %cst_6 = arith.constant dense<0.000000e+00> : vector<8x64xf32>
    %6 = tpu.matmul %4, %5, %cst_6 {dimension_numbers = #tpu.dot_dimension_numbers<[1], [0], [0], [1], [0, 0, 1, 1], [], []>} : vector<8x4xf32>, vector<4x64xf32>, vector<8x64xf32> -> vector<8x64xf32>
    %7 = arith.negf %6 : vector<8x64xf32>
    %8 = math.exp %7 : vector<8x64xf32>
    %cst_7 = arith.constant 1.000000e+00 : f32
    %9 = vector.broadcast %cst_7 : f32 to vector<8x64xf32>
    %10 = arith.addf %9, %8 : vector<8x64xf32>
    %11 = arith.divf %9, %10 : vector<8x64xf32>
    %12 = arith.mulf %0, %11 : vector<8x64xf32>
    %c0_8 = arith.constant 0 : index
    %c0_9 = arith.constant 0 : index
    %13 = vector.load %arg4[%c0_8, %c0_9] : memref<8x64xf32, #tpu.memory_space<vmem>>, vector<8x64xf32>
    tpu.vector_store %arg4[%c0_8, %c0_9], %12 {strides = array<i32>} : memref<8x64xf32, #tpu.memory_space<vmem>>, vector<8x64xf32>,
    return
  }
  func.func @transform_0(%arg0: i32) -> (i32, i32) {
    %c0_i32 = arith.constant 0 : i32
    %c0_i32_0 = arith.constant 0 : i32
    return %arg0, %c0_i32 : i32, i32
  }
  func.func @transform_1(%arg0: i32) -> (i32, i32) {
    %c0_i32 = arith.constant 0 : i32
    %c0_i32_0 = arith.constant 0 : i32
    %c0_i32_1 = arith.constant 0 : i32
    return %c0_i32, %c0_i32_0 : i32, i32
  }
  func.func @transform_2(%arg0: i32) -> (i32, i32) {
    %c0_i32 = arith.constant 0 : i32
    %c0_i32_0 = arith.constant 0 : i32
    %c0_i32_1 = arith.constant 0 : i32
    return %c0_i32, %c0_i32_0 : i32, i32
  }
  func.func @transform_3(%arg0: i32) -> (i32, i32) {
    %c0_i32 = arith.constant 0 : i32
    %c0_i32_0 = arith.constant 0 : i32
    return %arg0, %c0_i32 : i32, i32
  }
}

module attributes {stable_mosaic.version = 11 : i64} {
  func.func @_se_kernel(%arg0: i32, %arg1: memref<8x64xf32, #tpu.memory_space<vmem>>, %arg2: memref<64x4xf32, #tpu.memory_space<vmem>>, %arg3: memref<4x64xf32, #tpu.memory_space<vmem>>, %arg4: memref<8x64xf32, #tpu.memory_space<vmem>>) attributes {dimension_semantics = [#tpu.dimension_semantics<parallel>], iteration_bounds = array<i64: 1>, scalar_prefetch = 0 : i64, scratch_operands = 0 : i64, tpu.core_type = #tpu.core_type<tc>, window_params = [{transform_indices = @transform_0, window_bounds = array<i64: 8, 64>}, {pipeline_mode = #tpu.pipeline_mode<synchronous>, transform_indices = @transform_1, window_bounds = array<i64: 64, 4>}, {pipeline_mode = #tpu.pipeline_mode<synchronous>, transform_indices = @transform_2, window_bounds = array<i64: 4, 64>}, {transform_indices = @transform_3, window_bounds = array<i64: 8, 64>}]} {
    %c0 = arith.constant 0 : index
    %c0_0 = arith.constant 0 : index
    %0 = vector.load %arg1[%c0, %c0_0] : memref<8x64xf32, #tpu.memory_space<vmem>>, vector<8x64xf32>
    %c0_1 = arith.constant 0 : index
    %c0_2 = arith.constant 0 : index
    %1 = vector.load %arg2[%c0_1, %c0_2] : memref<64x4xf32, #tpu.memory_space<vmem>>, vector<64x4xf32>
    %cst = arith.constant dense<0.000000e+00> : vector<8x4xf32>
    %2 = tpu.matmul %0, %1, %cst {dimension_numbers = #tpu.dot_dimension_numbers<[1], [0], [0], [1], [0, 0, 1, 1], [], []>} : vector<8x64xf32>, vector<64x4xf32>, vector<8x4xf32> -> vector<8x4xf32>
    %cst_3 = arith.constant 0.000000e+00 : f32
    %3 = vector.broadcast %cst_3 : f32 to vector<8x4xf32>
    %4 = arith.maximumf %2, %3 : vector<8x4xf32>
    %c0_4 = arith.constant 0 : index
    %c0_5 = arith.constant 0 : index
    %5 = vector.load %arg3[%c0_4, %c0_5] : memref<4x64xf32, #tpu.memory_space<vmem>>, vector<4x64xf32>
    %cst_6 = arith.constant dense<0.000000e+00> : vector<8x64xf32>
    %6 = tpu.matmul %4, %5, %cst_6 {dimension_numbers = #tpu.dot_dimension_numbers<[1], [0], [0], [1], [0, 0, 1, 1], [], []>} : vector<8x4xf32>, vector<4x64xf32>, vector<8x64xf32> -> vector<8x64xf32>
    %7 = arith.negf %6 : vector<8x64xf32>
    %8 = math.exp %7 : vector<8x64xf32>
    %cst_7 = arith.constant 1.000000e+00 : f32
    %9 = vector.broadcast %cst_7 : f32 to vector<8x64xf32>
    %10 = arith.addf %9, %8 : vector<8x64xf32>
    %11 = arith.divf %9, %10 : vector<8x64xf32>
    %12 = arith.mulf %0, %11 : vector<8x64xf32>
    %c0_8 = arith.constant 0 : index
    %c0_9 = arith.constant 0 : index
    %13 = vector.load %arg4[%c0_8, %c0_9] : memref<8x64xf32, #tpu.memory_space<vmem>>, vector<8x64xf32>
    tpu.vector_store %arg4[%c0_8, %c0_9], %12 {strides = array<i32>} : memref<8x64xf32, #tpu.memory_space<vmem>>, vector<8x64xf32>,
    return
  }
  func.func @transform_0(%arg0: i32) -> (i32, i32) {
    %c0_i32 = arith.constant 0 : i32
    %c0_i32_0 = arith.constant 0 : i32
    return %arg0, %c0_i32 : i32, i32
  }
  func.func @transform_1(%arg0: i32) -> (i32, i32) {
    %c0_i32 = arith.constant 0 : i32
    %c0_i32_0 = arith.constant 0 : i32
    %c0_i32_1 = arith.constant 0 : i32
    return %c0_i32, %c0_i32_0 : i32, i32
  }
  func.func @transform_2(%arg0: i32) -> (i32, i32) {
    %c0_i32 = arith.constant 0 : i32
    %c0_i32_0 = arith.constant 0 : i32
    %c0_i32_1 = arith.constant 0 : i32
    return %c0_i32, %c0_i32_0 : i32, i32
  }
  func.func @transform_3(%arg0: i32) -> (i32, i32) {
    %c0_i32 = arith.constant 0 : i32
    %c0_i32_0 = arith.constant 0 : i32
    return %arg0, %c0_i32 : i32, i32
  }
}

</mosaic_0001>

<bundles_post_ra>
// kernel: tpu_custom_call.1
= control target key start
LH: loop header
LB: loop body
LE: loop exit
PB: predicated region body
PF: predicated region fallthrough
CT: control target
= control target key end

     0   :  { %s206_s0 = inlined_call_operand.vmem [shape: f32[8,64], index: 0, kind: input, shape index: {}]   ;;  %s207_s1 = inlined_call_operand.vmem [shape: f32[64,4], index: 1, kind: input, shape index: {}]   ;;  %s208_s2 = inlined_call_operand.vmem [shape: f32[4,64], index: 2, kind: input, shape index: {}]   ;;  %s209_s3 = inlined_call_operand.hbm [shape: f32[8,64], index: 3, kind: output, shape index: {}]  }
   0x1   :  { %v23_v0 = vld [vmem:[%s207_s1 + $0x38] sm:$0xff]  ;;  %v22_v1 = vld [vmem:[%s207_s1 + $0x30] sm:$0xff]  ;;  %v21_v2 = vld [vmem:[%s207_s1 + $0x28] sm:$0xff] }
   0x2   :  { %36 = vmatpush.msra.mxu0 %v23_v0 }
   0x4   :  { %37 = vmatpush.msra.mxu0 %v22_v1 }
   0x5   :  { %8 = vsyncpa [#allocation3], 0  ;;  %v20_v3 = vld [vmem:[%s207_s1 + $0x20] sm:$0xff]  ;;  %v19_v4 = vld [vmem:[%s207_s1 + $0x18] sm:$0xff]  ;;  %vm24_vm0 = vcmask 523264   ;;  %vm54_vm1 = vcmask 1043456  }
   0x6   :  { %38 = vmatpush.msra.mxu0 %v21_v2  ;;  %v18_v5 = vld [vmem:[%s207_s1 + $0x10] sm:$0xff]  ;;  %v17_v6 = vld [vmem:[%s207_s1 + $0x8] sm:$0xff]  ;;  %v16_v7 = vld [vmem:[%s207_s1] sm:$0xff]  ;;  %vm50_vm2 = vcmask 31744   ;;  %s106_s6 = sshll.u32 %s209_s3, 4  ;;  %s107_s6 = int_to_ptr.hbm [resolvable:$true] %s106_s6 }
   0x7   :  { %v15_v8 = vld [vmem:[%s206_s0] sm:$0xff]  ;;  %s150_s0 = smov [#allocation2]  }
   0x8   :  { %39 = vmatpush.msra.mxu0 %v20_v3  ;;  %v49_v9 = vld [vmem:[%s208_s2] sm:$0xf]  ;;  %s104_s1 = sshll.u32 %s150_s0, 4  ;;  %s105_s1 = int_to_ptr.vmem [resolvable:$true] %s104_s1 }
   0x9   :  { %116 = vmatpush.msk.msra.mxu1 %vm54_vm1, %v49_v9 }
   0xa   :  { %40 = vmatpush.msra.mxu0 %v19_v4 }
   0xc   :  { %41 = vmatpush.msra.mxu0 %v18_v5 }
   0xe   :  { %42 = vmatpush.msra.mxu0 %v17_v6 }
  0x10   :  { %43 = vmatpush.msra.mxu0 %v16_v7 }
  0x11   :  { %115 = vmatmul.msk.f32.vlgmr.msra.gmra.mxu0 %vm24_vm0, %v15_v8 }
  0x8e   :  { %v45_v10 = vpop.f32.mrf.mxu0 }
  0x8f   :  { %v48_v11 = vmax.f32 %v45_v10, 0.0 }
  0x91   :  { %117 = vmatmul.msk.f32.vlgmr.msra.gmra.mxu1 %vm50_vm2, %v48_v11 }
 0x10e   :  { %v75_v12 = vpop.f32.mrf.mxu1 }
 0x10f   :  { %v118_v13 = vmul.f32 -1.442695, %v75_v12 }
 0x111   :  { %120 = vpow2.f32 %v118_v13 }
 0x117   :  { %v121_v14 = vpop.eup %120 }
 0x118   :  { %v81_v15 = vadd.f32 1.0, %v121_v14 }
 0x11a   :  { %122 = vrcp.f32 %v81_v15  ;;  %v93_v19 = vand.u32 2147483648, %v81_v15  ;;  %v91_v21 = vand.u32 2147483647, %v81_v15  ;;  %vm87_vm4 = vweird.f32 %v81_v15 }
 0x11c   :  { %v94_v23 = vor.u32 1.1754944e-38, %v93_v19  ;;  %vm92_vm6 = vcmp.eq.f32.partialorder %v91_v21, 8.507059e+37 }
 0x120   :  { %v123_v16 = vpop.eup %122 }
 0x121   :  { %v83_v17 = vmul.f32 %v123_v16, %v81_v15  ;;  %vm88_vm3 = vweird.f32 %v123_v16 }
 0x122   :  { %vm89_vm5 = vmor %vm87_vm4, %vm88_vm3 }
 0x123   :  { %v84_v18 = vsub.f32 1.0, %v83_v17 }
 0x125   :  { %v85_v20 = vmul.f32 %v123_v16, %v84_v18 }
 0x127   :  { %v86_v22 = vadd.f32 %v123_v16, %v85_v20 }
 0x129   :  { %v90_v24 = vsel %vm89_vm5, %v123_v16, %v86_v22 }
 0x12a   :  { %v95_v25 = vsel %vm92_vm6, %v94_v23, %v90_v24 }
 0x12b   :  { %v97_v26 = vmul.f32 %v95_v25, %v15_v8 }
 0x12d   :  { %98 = vst.msk [vmem:[#allocation2] sm:$0xff] %vm24_vm0, %v97_v26 }
 0x12e   :  { %109 = dma.vmem_to_hbm [thread:$0]  %s105_s1, 128, %s107_s6, [#allocation3]  }
 0x12f   :  { %148 = dma.done.wait [#allocation3], 128  }
 0x130   :  { %149 = vsyncadd [#allocation3], 4294967168 }
 0x131   :  { %114 = vsyncpa [#allocation3], 1 }

// kernel: tpu_custom_call.1
= control target key start
LH: loop header
LB: loop body
LE: loop exit
PB: predicated region body
PF: predicated region fallthrough
CT: control target
= control target key end

     0   :  { %s206_s0 = inlined_call_operand.vmem [shape: f32[8,64], index: 0, kind: input, shape index: {}]   ;;  %s207_s1 = inlined_call_operand.vmem [shape: f32[64,4], index: 1, kind: input, shape index: {}]   ;;  %s208_s2 = inlined_call_operand.vmem [shape: f32[4,64], index: 2, kind: input, shape index: {}]   ;;  %s209_s3 = inlined_call_operand.hbm [shape: f32[8,64], index: 3, kind: output, shape index: {}]  }
   0x1   :  { %v23_v0 = vld [vmem:[%s207_s1 + $0x38] sm:$0xff]  ;;  %v22_v1 = vld [vmem:[%s207_s1 + $0x30] sm:$0xff]  ;;  %v21_v2 = vld [vmem:[%s207_s1 + $0x28] sm:$0xff] }
   0x2   :  { %36 = vmatpush.msra.mxu0 %v23_v0 }
   0x4   :  { %37 = vmatpush.msra.mxu0 %v22_v1 }
   0x5   :  { %8 = vsyncpa [#allocation3], 0  ;;  %v20_v3 = vld [vmem:[%s207_s1 + $0x20] sm:$0xff]  ;;  %v19_v4 = vld [vmem:[%s207_s1 + $0x18] sm:$0xff]  ;;  %vm24_vm0 = vcmask 523264   ;;  %vm54_vm1 = vcmask 1043456  }
   0x6   :  { %38 = vmatpush.msra.mxu0 %v21_v2  ;;  %v18_v5 = vld [vmem:[%s207_s1 + $0x10] sm:$0xff]  ;;  %v17_v6 = vld [vmem:[%s207_s1 + $0x8] sm:$0xff]  ;;  %v16_v7 = vld [vmem:[%s207_s1] sm:$0xff]  ;;  %vm50_vm2 = vcmask 31744   ;;  %s106_s6 = sshll.u32 %s209_s3, 4  ;;  %s107_s6 = int_to_ptr.hbm [resolvable:$true] %s106_s6 }
   0x7   :  { %v15_v8 = vld [vmem:[%s206_s0] sm:$0xff]  ;;  %s150_s0 = smov [#allocation2]  }
   0x8   :  { %39 = vmatpush.msra.mxu0 %v20_v3  ;;  %v49_v9 = vld [vmem:[%s208_s2] sm:$0xf]  ;;  %s104_s1 = sshll.u32 %s150_s0, 4  ;;  %s105_s1 = int_to_ptr.vmem [resolvable:$true] %s104_s1 }
   0x9   :  { %116 = vmatpush.msk.msra.mxu1 %vm54_vm1, %v49_v9 }
   0xa   :  { %40 = vmatpush.msra.mxu0 %v19_v4 }
   0xc   :  { %41 = vmatpush.msra.mxu0 %v18_v5 }
   0xe   :  { %42 = vmatpush.msra.mxu0 %v17_v6 }
  0x10   :  { %43 = vmatpush.msra.mxu0 %v16_v7 }
  0x11   :  { %115 = vmatmul.msk.f32.vlgmr.msra.gmra.mxu0 %vm24_vm0, %v15_v8 }
  0x8e   :  { %v45_v10 = vpop.f32.mrf.mxu0 }
  0x8f   :  { %v48_v11 = vmax.f32 %v45_v10, 0.0 }
  0x91   :  { %117 = vmatmul.msk.f32.vlgmr.msra.gmra.mxu1 %vm50_vm2, %v48_v11 }
 0x10e   :  { %v75_v12 = vpop.f32.mrf.mxu1 }
 0x10f   :  { %v118_v13 = vmul.f32 -1.442695, %v75_v12 }
 0x111   :  { %120 = vpow2.f32 %v118_v13 }
 0x117   :  { %v121_v14 = vpop.eup %120 }
 0x118   :  { %v81_v15 = vadd.f32 1.0, %v121_v14 }
 0x11a   :  { %122 = vrcp.f32 %v81_v15  ;;  %v93_v19 = vand.u32 2147483648, %v81_v15  ;;  %v91_v21 = vand.u32 2147483647, %v81_v15  ;;  %vm87_vm4 = vweird.f32 %v81_v15 }
 0x11c   :  { %v94_v23 = vor.u32 1.1754944e-38, %v93_v19  ;;  %vm92_vm6 = vcmp.eq.f32.partialorder %v91_v21, 8.507059e+37 }
 0x120   :  { %v123_v16 = vpop.eup %122 }
 0x121   :  { %v83_v17 = vmul.f32 %v123_v16, %v81_v15  ;;  %vm88_vm3 = vweird.f32 %v123_v16 }
 0x122   :  { %vm89_vm5 = vmor %vm87_vm4, %vm88_vm3 }
 0x123   :  { %v84_v18 = vsub.f32 1.0, %v83_v17 }
 0x125   :  { %v85_v20 = vmul.f32 %v123_v16, %v84_v18 }
 0x127   :  { %v86_v22 = vadd.f32 %v123_v16, %v85_v20 }
 0x129   :  { %v90_v24 = vsel %vm89_vm5, %v123_v16, %v86_v22 }
 0x12a   :  { %v95_v25 = vsel %vm92_vm6, %v94_v23, %v90_v24 }
 0x12b   :  { %v97_v26 = vmul.f32 %v95_v25, %v15_v8 }
 0x12d   :  { %98 = vst.msk [vmem:[#allocation2] sm:$0xff] %vm24_vm0, %v97_v26 }
 0x12e   :  { %109 = dma.vmem_to_hbm [thread:$0]  %s105_s1, 128, %s107_s6, [#allocation3]  }
 0x12f   :  { %148 = dma.done.wait [#allocation3], 128  }
 0x130   :  { %149 = vsyncadd [#allocation3], 4294967168 }
 0x131   :  { %114 = vsyncpa [#allocation3], 1 }

</bundles_post_ra>
